<compile_context>
chip_gen: v6e
topology: v6e:2x2x1
jax: 0.10.0
libtpu: 0.0.40
codegen_flags: <defaults>
</compile_context>

<pallas_src>
import math
import functools

import jax
import jax.numpy as jnp
from jax import lax
from jax.experimental import pallas as pl
from jax.experimental.pallas import tpu as pltpu


# ---------------------------------------------------------------------------
# small in-kernel helpers
# ---------------------------------------------------------------------------
def _silu(x):
    # x * sigmoid(x); the reciprocal goes to the EUP instead of a VALU divide.
    return x * pl.reciprocal(1.0 + jnp.exp(-x), approx=True)


def _mm33(a, b):
    """(a @ b)[3i+k] = sum_j a[3i+j] * b[3j+k], elementwise over (n, H) slabs."""
    out = []
    for i in range(3):
        for k in range(3):
            out.append(a[3 * i + 0] * b[0 + k]
                       + a[3 * i + 1] * b[3 + k]
                       + a[3 * i + 2] * b[6 + k])
    return out


def _decompose(t):
    """9 component slabs (k = 3i+j) -> 10 irrep slabs [d, a01,a02,a12, s00,s01,s02,s11,s12,s22]."""
    d = (t[0] + t[4] + t[8]) * (1.0 / 3.0)
    a01 = 0.5 * (t[1] - t[3]); a02 = 0.5 * (t[2] - t[6]); a12 = 0.5 * (t[5] - t[7])
    s00 = t[0] - d; s11 = t[4] - d; s22 = t[8] - d
    s01 = 0.5 * (t[1] + t[3]); s02 = 0.5 * (t[2] + t[6]); s12 = 0.5 * (t[5] + t[7])
    return [d, a01, a02, a12, s00, s01, s02, s11, s12, s22]


def _recompose(m):
    """10 irrep slabs -> 9 component slabs of I + A + S (sign/copy on the VPU)."""
    d, a01, a02, a12, s00, s01, s02, s11, s12, s22 = m
    return [d + s00, a01 + s01, a02 + s02,
            s01 - a01, d + s11, a12 + s12,
            s02 - a02, s12 - a12, d + s22]


def _channel_mix(slabs, wmix_ref, fuse):
    """Apply the 3 per-irrep HxH linears. wmix_ref is [wI | wA | wS] (H, 3H).

    fuse=True : one (10n, H) @ (H, 3H) dot, pick the relevant H-wide column
                block per row group (better MXU lane occupancy for H < 128).
    fuse=False: 3 batched per-irrep dots (avoids the 3x redundant FLOPs when
                H is already MXU-lane-wide).
    """
    n, H = slabs[0].shape
    f32 = jnp.float32
    if fuse:
        lhs = jnp.concatenate(slabs, axis=0)                      # (10n, H)
        res = jnp.dot(lhs, wmix_ref[...], preferred_element_type=f32)  # (10n, 3H)
        cols = (0, 1, 1, 1, 2, 2, 2, 2, 2, 2)
        return [res[k * n:(k + 1) * n, cols[k] * H:(cols[k] + 1) * H] for k in range(10)]
    w = wmix_ref[...]
    d_m = jnp.dot(slabs[0], w[:, 0:H], preferred_element_type=f32)
    a_m = jnp.dot(jnp.concatenate(slabs[1:4], axis=0), w[:, H:2 * H],
                  preferred_element_type=f32)
    s_m = jnp.dot(jnp.concatenate(slabs[4:10], axis=0), w[:, 2 * H:3 * H],
                  preferred_element_type=f32)
    return ([d_m] + [a_m[k * n:(k + 1) * n] for k in range(3)]
            + [s_m[k * n:(k + 1) * n] for k in range(6)])


# ---------------------------------------------------------------------------
# kernel 1: per-edge cutoff + scalar MLP (tiled over edges, "parallel")
# ---------------------------------------------------------------------------
def _edge_kernel(ew_ref, rbf_ref, w1_ref, b1_ref, w2_ref, b2_ref, w3_ref, b3_ref,
                 f_ref, *, cutoff_lower, cutoff_upper, n_edges, edge_tile):
    f32 = jnp.float32
    d = ew_ref[...]                                                # (TE, 1)

    if cutoff_lower > 0:
        c = 0.5 * (jnp.cos(math.pi * (2.0 * (d - cutoff_lower)
                                      / (cutoff_upper - cutoff_lower) + 1.0)) + 1.0)
        c = c * (d < cutoff_upper).astype(f32) * (d > cutoff_lower).astype(f32)
    else:
        c = 0.5 * (jnp.cos(d * (math.pi / cutoff_upper)) + 1.0)
        c = c * (d < cutoff_upper).astype(f32)

    h = _silu(jnp.dot(rbf_ref[...], w1_ref[...], preferred_element_type=f32) + b1_ref[...])
    h = _silu(jnp.dot(h, w2_ref[...], preferred_element_type=f32) + b2_ref[...])
    f = _silu(jnp.dot(h, w3_ref[...], preferred_element_type=f32) + b3_ref[...]) * c

    # zero padded edge rows so the message-passing kernel can skip masking
    rows = pl.program_id(0) * edge_tile + lax.broadcasted_iota(jnp.int32, (edge_tile, 1), 0)
    f_ref[...] = f * (rows < n_edges).astype(f32)


# ---------------------------------------------------------------------------
# kernel 2: per-atom normalize + decompose + first channel mix ("parallel")
# ---------------------------------------------------------------------------
def _atom_pre_kernel(x_ref, wmix_ref, mix_ref, *, hidden, fuse):
    H = hidden
    x = x_ref[...]                                                 # (TN, 9H), k = 3i+j
    xs = [x[:, k * H:(k + 1) * H] for k in range(9)]
    inv = 1.0 / (sum(v * v for v in xs) + 1.0)                     # exact divide (norm)
    xs = [v * inv for v in xs]
    mixed = _channel_mix(_decompose(xs), wmix_ref, fuse)
    for k in range(10):                                            # slab-wise direct store
        mix_ref[:, k * H:(k + 1) * H] = mixed[k]


# ---------------------------------------------------------------------------
# kernel 3: message passing via scalar-prefetched edge_index ("arbitrary")
#   gather source-atom mixed slabs, scale by edge factors, scatter-add to dst
# ---------------------------------------------------------------------------
def _message_kernel(src_ref, dst_ref, f_ref, mix_ref, msg_ref, *, hidden, edge_tile):
    H = hidden

    @pl.when(pl.program_id(0) == 0)
    def _():
        msg_ref[...] = jnp.zeros_like(msg_ref)

    base = pl.program_id(0) * edge_tile

    def body(e, carry):
        src = src_ref[base + e]
        dst = dst_ref[base + e]
        row = mix_ref[pl.ds(src, 1), :]                            # (1, 10H) gather
        frow = f_ref[pl.ds(e, 1), :]                               # (1, 3H)
        fi = frow[:, 0:H]; fa = frow[:, H:2 * H]; fs = frow[:, 2 * H:3 * H]
        d = row[:, 0:H]
        a01 = row[:, 1 * H:2 * H]; a02 = row[:, 2 * H:3 * H]; a12 = row[:, 3 * H:4 * H]
        s00 = row[:, 4 * H:5 * H]; s01 = row[:, 5 * H:6 * H]; s02 = row[:, 6 * H:7 * H]
        s11 = row[:, 7 * H:8 * H]; s12 = row[:, 8 * H:9 * H]; s22 = row[:, 9 * H:10 * H]
        fid = fi * d
        m = jnp.concatenate(
            [fid + fs * s00, fa * a01 + fs * s01, fa * a02 + fs * s02,
             fs * s01 - fa * a01, fid + fs * s11, fa * a12 + fs * s12,
             fs * s02 - fa * a02, fs * s12 - fa * a12, fid + fs * s22], axis=1)
        # scatter-add (padded edges have f == 0, dst == 0 -> add exact zero)
        msg_ref[pl.ds(dst, 1), :] = msg_ref[pl.ds(dst, 1), :] + m
        return carry

    lax.fori_loop(0, edge_tile, body, 0)


# ---------------------------------------------------------------------------
# kernel 4: per-atom equivariant combination + second mix + output ("parallel")
# ---------------------------------------------------------------------------
def _atom_post_kernel(x_ref, mix_ref, msg_ref, q_ref, wmix_ref, out_ref,
                      *, hidden, group, fuse):
    H = hidden
    n = mix_ref.shape[0]

    mixed = [mix_ref[:, k * H:(k + 1) * H] for k in range(10)]
    y = _recompose(mixed)                                          # Y = I + A + S
    m = [msg_ref[:, k * H:(k + 1) * H] for k in range(9)]

    # hoist the (n,1)->(n,H) broadcast once and reuse it everywhere
    scale_b = jnp.broadcast_to(1.0 + 0.1 * q_ref[...], (n, H))

    if group == "O(3)":
        my = _mm33(m, y)
        ym = _mm33(y, m)
        t2 = [scale_b * (my[k] + ym[k]) for k in range(9)]
    else:  # "SO(3)"
        ym = _mm33(y, m)
        t2 = [2.0 * ym[k] for k in range(9)]

    # I2 + A2 + S2 == t2 exactly, so the Frobenius norm is taken on t2 directly.
    inv2 = 1.0 / (sum(v * v for v in t2) + 1.0)                    # exact divide (norm)
    irreps2 = [v * inv2 for v in _decompose(t2)]
    dx = _recompose(_channel_mix(irreps2, wmix_ref, fuse))
    dx2 = _mm33(dx, dx)                                            # matrix_power(dX, 2)

    # recompute normalized X right before the store (keeps live ranges short)
    x = x_ref[...]
    xs = [x[:, k * H:(k + 1) * H] for k in range(9)]
    invx = 1.0 / (sum(v * v for v in xs) + 1.0)
    for k in range(9):                                             # slab-wise direct store
        out_ref[:, k * H:(k + 1) * H] = xs[k] * invx + dx[k] + scale_b * dx2[k]


# ---------------------------------------------------------------------------
# wrapper: layout plumbing, padding, tile/budget selection, 4 pallas_calls
# ---------------------------------------------------------------------------
def _round_up(x, m):
    return ((x + m - 1) // m) * m


def _vmem_budget_bytes():
    # ~75% of physical VMEM per TensorCore: v5e/v6e (128 MiB) -> 96 MiB,
    # v7x (64 MiB/TC) -> 48 MiB. Conservative fallback if the query fails.
    try:
        cap = int(pltpu.get_tpu_info().vmem_capacity_bytes)
    except Exception:
        cap = 64 * 1024 * 1024
    return max(32 * 1024 * 1024, (cap * 3) // 4)


def interaction_apply(params, X, edge_index, edge_weight, edge_attr, q,
                      *, cutoff_lower=0.0, cutoff_upper=5.0, group="O(3)"):
    (w1, b1, w2, b2, w3i, b3i, w3a, b3a, w3s, b3s,
     wt0, wt1, wt2, wt3, wt4, wt5) = params
    f32 = jnp.float32
    n_atoms, hidden = X.shape[0], X.shape[1]
    n_edges = edge_index.shape[1]
    num_rbf = edge_attr.shape[1]

    # --- layouts -------------------------------------------------------------
    # component-major lane-concatenated slabs: x_flat[n, (3i+j)*H + h] = X[n,h,i,j]
    x_flat = jnp.transpose(X, (0, 2, 3, 1)).reshape(n_atoms, 9 * hidden).astype(f32)
    w3 = jnp.concatenate([w3i, w3a, w3s], axis=1)                  # fused (2H, 3H)
    b3 = jnp.concatenate([b3i, b3a, b3s], axis=1)                  # (1, 3H)
    wmix1 = jnp.concatenate([wt0, wt1, wt2], axis=1)               # (H, 3H)
    wmix2 = jnp.concatenate([wt3, wt4, wt5], axis=1)               # (H, 3H)
    fuse_mix = hidden < 128     # fused (H,3H) RHS only helps when H is lane-narrow

    # --- generation-aware tile + VMEM budget selection ------------------------
    budget = _vmem_budget_bytes()
    big_vmem = budget >= 80 * 1024 * 1024                          # v5e/v6e class
    edge_tile_target = 2048 if big_vmem else 1024
    atom_tile_target = 512 if big_vmem else 256
    edge_tile = edge_tile_target if n_edges >= edge_tile_target else _round_up(max(n_edges, 1), 8)
    atom_tile = atom_tile_target if n_atoms >= atom_tile_target else _round_up(max(n_atoms, 1), 8)
    e_pad = _round_up(n_edges, edge_tile)
    n_pad = _round_up(n_atoms, atom_tile)

    def pad_rows(a, rows):
        extra = rows - a.shape[0]
        if extra == 0:
            return a
        return jnp.pad(a, ((0, extra),) + ((0, 0),) * (a.ndim - 1))

    rbf_pad = pad_rows(edge_attr.astype(f32), e_pad)
    ew_pad = pad_rows(edge_weight.reshape(n_edges, 1).astype(f32), e_pad)
    x_pad = pad_rows(x_flat, n_pad)
    q_pad = pad_rows(q.reshape(n_atoms, 1).astype(f32), n_pad)
    src_idx = pad_rows(edge_index[1].astype(jnp.int32), e_pad)     # gather from
    dst_idx = pad_rows(edge_index[0].astype(jnp.int32), e_pad)     # scatter to

    const = lambda i: (0, 0)
    cp_par = pltpu.CompilerParams(dimension_semantics=("parallel",),
                                  vmem_limit_bytes=budget)
    cp_arb = pltpu.CompilerParams(dimension_semantics=("arbitrary",),
                                  vmem_limit_bytes=budget)

    # --- kernel 1: edge factors f = silu-MLP(rbf) * cutoff(d) -----------------
    f = pl.pallas_call(
        functools.partial(_edge_kernel, cutoff_lower=cutoff_lower,
                          cutoff_upper=cutoff_upper, n_edges=n_edges,
                          edge_tile=edge_tile),
        out_shape=jax.ShapeDtypeStruct((e_pad, 3 * hidden), f32),
        grid=(e_pad // edge_tile,),
        in_specs=[pl.BlockSpec((edge_tile, 1), lambda i: (i, 0)),
                  pl.BlockSpec((edge_tile, num_rbf), lambda i: (i, 0)),
                  pl.BlockSpec((num_rbf, hidden), const),
                  pl.BlockSpec((1, hidden), const),
                  pl.BlockSpec((hidden, 2 * hidden), const),
                  pl.BlockSpec((1, 2 * hidden), const),
                  pl.BlockSpec((2 * hidden, 3 * hidden), const),
                  pl.BlockSpec((1, 3 * hidden), const)],
        out_specs=pl.BlockSpec((edge_tile, 3 * hidden), lambda i: (i, 0)),
        compiler_params=cp_par,
    )(ew_pad, rbf_pad, w1, b1, w2, b2, w3, b3)

    # --- kernel 2: normalize X, decompose, first channel mix ------------------
    mix10 = pl.pallas_call(
        functools.partial(_atom_pre_kernel, hidden=hidden, fuse=fuse_mix),
        out_shape=jax.ShapeDtypeStruct((n_pad, 10 * hidden), f32),
        grid=(n_pad // atom_tile,),
        in_specs=[pl.BlockSpec((atom_tile, 9 * hidden), lambda i: (i, 0)),
                  pl.BlockSpec((hidden, 3 * hidden), const)],
        out_specs=pl.BlockSpec((atom_tile, 10 * hidden), lambda i: (i, 0)),
        compiler_params=cp_par,
    )(x_pad, wmix1)

    # --- kernel 3: scalar-prefetched gather / scatter-add message passing -----
    msg = pl.pallas_call(
        functools.partial(_message_kernel, hidden=hidden, edge_tile=edge_tile),
        out_shape=jax.ShapeDtypeStruct((n_pad, 9 * hidden), f32),
        grid_spec=pltpu.PrefetchScalarGridSpec(
            num_scalar_prefetch=2,
            grid=(e_pad // edge_tile,),
            in_specs=[pl.BlockSpec((edge_tile, 3 * hidden), lambda i, *_: (i, 0)),
                      pl.BlockSpec((n_pad, 10 * hidden), lambda i, *_: (0, 0))],
            out_specs=pl.BlockSpec((n_pad, 9 * hidden), lambda i, *_: (0, 0))),
        compiler_params=cp_arb,
    )(src_idx, dst_idx, f, mix10)

    # --- kernel 4: Y/msg algebra, second mix, final output --------------------
    # TODO(synk): x_pad could alias the output buffer via input_output_aliases
    # (same (n_pad, 9H) f32 shape) to save one HBM allocation.
    out_flat = pl.pallas_call(
        functools.partial(_atom_post_kernel, hidden=hidden, group=group, fuse=fuse_mix),
        out_shape=jax.ShapeDtypeStruct((n_pad, 9 * hidden), f32),
        grid=(n_pad // atom_tile,),
        in_specs=[pl.BlockSpec((atom_tile, 9 * hidden), lambda i: (i, 0)),
                  pl.BlockSpec((atom_tile, 10 * hidden), lambda i: (i, 0)),
                  pl.BlockSpec((atom_tile, 9 * hidden), lambda i: (i, 0)),
                  pl.BlockSpec((atom_tile, 1), lambda i: (i, 0)),
                  pl.BlockSpec((hidden, 3 * hidden), const)],
        out_specs=pl.BlockSpec((atom_tile, 9 * hidden), lambda i: (i, 0)),
        compiler_params=cp_par,
    )(x_pad, mix10, msg, q_pad, wmix2)

    out = out_flat[:n_atoms].reshape(n_atoms, 3, 3, hidden)
    return jnp.transpose(out, (0, 3, 1, 2))


# ---------------------------------------------------------------------------
# pure-JAX reference (mirrors the PyTorch module semantics exactly)
# ---------------------------------------------------------------------------
def interaction_reference(params, X, edge_index, edge_weight, edge_attr, q,
                          *, cutoff_lower=0.0, cutoff_upper=5.0, group="O(3)"):
    (w1, b1, w2, b2, w3i, b3i, w3a, b3a, w3s, b3s,
     wt0, wt1, wt2, wt3, wt4, wt5) = params
    n_atoms, hidden = X.shape[0], X.shape[1]

    # rebuild the interleaved (2H -> 3H) linear exactly as PyTorch stores it
    w3 = jnp.stack([w3i, w3a, w3s], axis=-1).reshape(w3i.shape[0], 3 * hidden)
    b3 = jnp.stack([b3i[0], b3a[0], b3s[0]], axis=-1).reshape(3 * hidden)

    hi = "highest"
    silu = jax.nn.silu
    if cutoff_lower > 0:
        C = 0.5 * (jnp.cos(jnp.pi * (2 * (edge_weight - cutoff_lower)
                                     / (cutoff_upper - cutoff_lower) + 1.0)) + 1.0)
        C = C * (edge_weight < cutoff_upper) * (edge_weight > cutoff_lower)
    else:
        C = 0.5 * (jnp.cos(edge_weight * jnp.pi / cutoff_upper) + 1.0)
        C = C * (edge_weight < cutoff_upper)

    h = silu(jnp.dot(edge_attr, w1, precision=hi) + b1)
    h = silu(jnp.dot(h, w2, precision=hi) + b2)
    h = silu(jnp.dot(h, w3, precision=hi) + b3)
    ea = (h * C[:, None]).reshape(h.shape[0], hidden, 3)

    def tnorm(t):
        return jnp.sum(t ** 2, axis=(-2, -1))

    def decomp(t):
        eye = jnp.eye(3, dtype=t.dtype)
        i_p = jnp.mean(jnp.diagonal(t, axis1=-2, axis2=-1), axis=-1)[..., None, None] * eye
        a_p = 0.5 * (t - jnp.swapaxes(t, -2, -1))
        s_p = 0.5 * (t + jnp.swapaxes(t, -2, -1)) - i_p
        return i_p, a_p, s_p

    def mix(t, w):
        return jnp.einsum("nhij,hg->ngij", t, w, precision=hi)

    def mp(factor, t):
        msgv = factor * t[edge_index[1]]
        return jnp.zeros((n_atoms,) + t.shape[1:], t.dtype).at[edge_index[0]].add(msgv)

    Xn = X / (tnorm(X) + 1)[..., None, None]
    I, A, S = decomp(Xn)
    I, A, S = mix(I, wt0), mix(A, wt1), mix(S, wt2)
    Y = I + A + S
    Im = mp(ea[..., 0, None, None], I)
    Am = mp(ea[..., 1, None, None], A)
    Sm = mp(ea[..., 2, None, None], S)
    msg = Im + Am + Sm
    if group == "O(3)":
        Amat = jnp.matmul(msg, Y)
        Bmat = jnp.matmul(Y, msg)
        I, A, S = decomp((1 + 0.1 * q[..., None, None, None]) * (Amat + Bmat))
    else:
        Bmat = jnp.matmul(Y, msg)
        I, A, S = decomp(2 * Bmat)
    normp1 = (tnorm(I + A + S) + 1)[..., None, None]
    I, A, S = I / normp1, A / normp1, S / normp1
    I, A, S = mix(I, wt3), mix(A, wt4), mix(S, wt5)
    dX = I + A + S
    return Xn + dX + (1 + 0.1 * q[..., None, None, None]) * jnp.matmul(dX, dX)


# ---------------------------------------------------------------------------
# deterministic parameter construction (synthetic; no checkpoint loading)
# ---------------------------------------------------------------------------
def make_params(key, num_rbf, hidden):
    def lin(k, fan_in, fan_out, bias=True):
        k_w, k_b = jax.random.split(k)
        bound = 1.0 / math.sqrt(fan_in)
        w = jax.random.uniform(k_w, (fan_in, fan_out), jnp.float32, -bound, bound)
        if not bias:
            return (w,)
        b = jax.random.uniform(k_b, (1, fan_out), jnp.float32, -bound, bound)
        return (w, b)

    keys = jax.random.split(key, 11)
    w1, b1 = lin(keys[0], num_rbf, hidden)
    w2, b2 = lin(keys[1], hidden, 2 * hidden)
    w3i, b3i = lin(keys[2], 2 * hidden, hidden)
    w3a, b3a = lin(keys[3], 2 * hidden, hidden)
    w3s, b3s = lin(keys[4], 2 * hidden, hidden)
    wt = [lin(keys[5 + t], hidden, hidden, bias=False)[0] for t in range(6)]
    return (w1, b1, w2, b2, w3i, b3i, w3a, b3a, w3s, b3s, *wt)


if __name__ == "__main__":
    N_ATOMS, HIDDEN, NUM_RBF, N_EDGES = 8, 32, 16, 20
    CUTOFF_LOWER, CUTOFF_UPPER, GROUP = 0.0, 5.0, "O(3)"

    root = jax.random.PRNGKey(0)
    k_p, k_x, k_ei, k_ew, k_ea, k_q = jax.random.split(root, 6)

    params = make_params(k_p, NUM_RBF, HIDDEN)
    X = 0.1 * jax.random.normal(k_x, (N_ATOMS, HIDDEN, 3, 3), jnp.float32)
    edge_index = jax.random.randint(k_ei, (2, N_EDGES), 0, N_ATOMS, jnp.int32)
    edge_weight = jax.random.uniform(k_ew, (N_EDGES,), jnp.float32, 0.5, 4.5)
    edge_attr = jax.random.normal(k_ea, (N_EDGES, NUM_RBF), jnp.float32)
    q = jax.random.uniform(k_q, (N_ATOMS,), jnp.float32, -1.0, 1.0)

    out = interaction_apply(params, X, edge_index, edge_weight, edge_attr, q,
                            cutoff_lower=CUTOFF_LOWER, cutoff_upper=CUTOFF_UPPER,
                            group=GROUP)
    jax.block_until_ready(out)

    ref = interaction_reference(params, X, edge_index, edge_weight, edge_attr, q,
                                cutoff_lower=CUTOFF_LOWER, cutoff_upper=CUTOFF_UPPER,
                                group=GROUP)
    assert out.shape == (N_ATOMS, HIDDEN, 3, 3)
    assert jnp.allclose(out, ref, atol=1e-3, rtol=1e-2), float(jnp.max(jnp.abs(out - ref)))

    print("KERNEL_OK")
</pallas_src>

<mosaic_0001>
module attributes {stable_mosaic.version = 11 : i64} {
  func.func @_edge_kernel(%arg0: i32, %arg1: memref<24x1xf32, #tpu.memory_space<vmem>>, %arg2: memref<24x16xf32, #tpu.memory_space<vmem>>, %arg3: memref<16x32xf32, #tpu.memory_space<vmem>>, %arg4: memref<1x32xf32, #tpu.memory_space<vmem>>, %arg5: memref<32x64xf32, #tpu.memory_space<vmem>>, %arg6: memref<1x64xf32, #tpu.memory_space<vmem>>, %arg7: memref<64x96xf32, #tpu.memory_space<vmem>>, %arg8: memref<1x96xf32, #tpu.memory_space<vmem>>, %arg9: memref<24x96xf32, #tpu.memory_space<vmem>>) attributes {dimension_semantics = [#tpu.dimension_semantics<parallel>], iteration_bounds = array<i64: 1>, scalar_prefetch = 0 : i64, scratch_operands = 0 : i64, tpu.core_type = #tpu.core_type<tc>, window_params = [{transform_indices = @transform_0, window_bounds = array<i64: 24, 1>}, {transform_indices = @transform_1, window_bounds = array<i64: 24, 16>}, {pipeline_mode = #tpu.pipeline_mode<synchronous>, transform_indices = @transform_2, window_bounds = array<i64: 16, 32>}, {pipeline_mode = #tpu.pipeline_mode<synchronous>, transform_indices = @transform_3, window_bounds = array<i64: 1, 32>}, {pipeline_mode = #tpu.pipeline_mode<synchronous>, transform_indices = @transform_4, window_bounds = array<i64: 32, 64>}, {pipeline_mode = #tpu.pipeline_mode<synchronous>, transform_indices = @transform_5, window_bounds = array<i64: 1, 64>}, {pipeline_mode = #tpu.pipeline_mode<synchronous>, transform_indices = @transform_6, window_bounds = array<i64: 64, 96>}, {pipeline_mode = #tpu.pipeline_mode<synchronous>, transform_indices = @transform_7, window_bounds = array<i64: 1, 96>}, {transform_indices = @transform_8, window_bounds = array<i64: 24, 96>}]} {
    %c0 = arith.constant 0 : index
    %c0_0 = arith.constant 0 : index
    %0 = vector.load %arg1[%c0, %c0_0] : memref<24x1xf32, #tpu.memory_space<vmem>>, vector<24x1xf32>
    %cst = arith.constant 0.628318548 : f32
    %1 = vector.broadcast %cst : f32 to vector<24x1xf32>
    %2 = arith.mulf %0, %1 : vector<24x1xf32>
    %3 = math.cos %2 : vector<24x1xf32>
    %cst_1 = arith.constant 1.000000e+00 : f32
    %4 = vector.broadcast %cst_1 : f32 to vector<24x1xf32>
    %5 = arith.addf %3, %4 : vector<24x1xf32>
    %cst_2 = arith.constant 5.000000e-01 : f32
    %6 = vector.broadcast %cst_2 : f32 to vector<24x1xf32>
    %7 = arith.mulf %6, %5 : vector<24x1xf32>
    %cst_3 = arith.constant 5.000000e+00 : f32
    %8 = vector.broadcast %cst_3 : f32 to vector<24x1xf32>
    %9 = arith.cmpf olt, %0, %8 : vector<24x1xf32>
    %10 = arith.extui %9 : vector<24x1xi1> to vector<24x1xi32>
    %11 = arith.sitofp %10 : vector<24x1xi32> to vector<24x1xf32>
    %12 = arith.mulf %7, %11 : vector<24x1xf32>
    %c0_4 = arith.constant 0 : index
    %c0_5 = arith.constant 0 : index
    %13 = vector.load %arg2[%c0_4, %c0_5] : memref<24x16xf32, #tpu.memory_space<vmem>>, vector<24x16xf32>
    %c0_6 = arith.constant 0 : index
    %c0_7 = arith.constant 0 : index
    %14 = vector.load %arg3[%c0_6, %c0_7] : memref<16x32xf32, #tpu.memory_space<vmem>>, vector<16x32xf32>
    %cst_8 = arith.constant dense<0.000000e+00> : vector<24x32xf32>
    %15 = tpu.matmul %13, %14, %cst_8 {dimension_numbers = #tpu.dot_dimension_numbers<[1], [0], [0], [1], [0, 0, 1, 1], [], []>} : vector<24x16xf32>, vector<16x32xf32>, vector<24x32xf32> -> vector<24x32xf32>
    %c0_9 = arith.constant 0 : index
    %c0_10 = arith.constant 0 : index
    %16 = vector.load %arg4[%c0_9, %c0_10] : memref<1x32xf32, #tpu.memory_space<vmem>>, vector<1x32xf32>
    %17 = vector.broadcast %16 : vector<1x32xf32> to vector<24x32xf32>
    %18 = arith.addf %15, %17 : vector<24x32xf32>
    %cst_11 = arith.constant 0.000000e+00 : f32
    %19 = vector.broadcast %cst_11 : f32 to vector<24x32xf32>
    %20 = arith.subf %19, %18 : vector<24x32xf32>
    %21 = math.exp %20 : vector<24x32xf32>
    %cst_12 = arith.constant 1.000000e+00 : f32
    %22 = vector.broadcast %cst_12 : f32 to vector<24x32xf32>
    %23 = arith.addf %22, %21 : vector<24x32xf32>
    %24 = tpu.reciprocal %23 {approx = true} : vector<24x32xf32> -> vector<24x32xf32>
    %25 = arith.mulf %18, %24 : vector<24x32xf32>
    %c0_13 = arith.constant 0 : index
    %c0_14 = arith.constant 0 : index
    %26 = vector.load %arg5[%c0_13, %c0_14] : memref<32x64xf32, #tpu.memory_space<vmem>>, vector<32x64xf32>
    %cst_15 = arith.constant dense<0.000000e+00> : vector<24x64xf32>
    %27 = tpu.matmul %25, %26, %cst_15 {dimension_numbers = #tpu.dot_dimension_numbers<[1], [0], [0], [1], [0, 0, 1, 1], [], []>} : vector<24x32xf32>, vector<32x64xf32>, vector<24x64xf32> -> vector<24x64xf32>
    %c0_16 = arith.constant 0 : index
    %c0_17 = arith.constant 0 : index
    %28 = vector.load %arg6[%c0_16, %c0_17] : memref<1x64xf32, #tpu.memory_space<vmem>>, vector<1x64xf32>
    %29 = vector.broadcast %28 : vector<1x64xf32> to vector<24x64xf32>
    %30 = arith.addf %27, %29 : vector<24x64xf32>
    %cst_18 = arith.constant 0.000000e+00 : f32
    %31 = vector.broadcast %cst_18 : f32 to vector<24x64xf32>
    %32 = arith.subf %31, %30 : vector<24x64xf32>
    %33 = math.exp %32 : vector<24x64xf32>
    %cst_19 = arith.constant 1.000000e+00 : f32
    %34 = vector.broadcast %cst_19 : f32 to vector<24x64xf32>
    %35 = arith.addf %34, %33 : vector<24x64xf32>
    %36 = tpu.reciprocal %35 {approx = true} : vector<24x64xf32> -> vector<24x64xf32>
    %37 = arith.mulf %30, %36 : vector<24x64xf32>
    %c0_20 = arith.constant 0 : index
    %c0_21 = arith.constant 0 : index
    %38 = vector.load %arg7[%c0_20, %c0_21] : memref<64x96xf32, #tpu.memory_space<vmem>>, vector<64x96xf32>
    %cst_22 = arith.constant dense<0.000000e+00> : vector<24x96xf32>
    %39 = tpu.matmul %37, %38, %cst_22 {dimension_numbers = #tpu.dot_dimension_numbers<[1], [0], [0], [1], [0, 0, 1, 1], [], []>} : vector<24x64xf32>, vector<64x96xf32>, vector<24x96xf32> -> vector<24x96xf32>
    %c0_23 = arith.constant 0 : index
    %c0_24 = arith.constant 0 : index
    %40 = vector.load %arg8[%c0_23, %c0_24] : memref<1x96xf32, #tpu.memory_space<vmem>>, vector<1x96xf32>
    %41 = vector.broadcast %40 : vector<1x96xf32> to vector<24x96xf32>
    %42 = arith.addf %39, %41 : vector<24x96xf32>
    %cst_25 = arith.constant 0.000000e+00 : f32
    %43 = vector.broadcast %cst_25 : f32 to vector<24x96xf32>
    %44 = arith.subf %43, %42 : vector<24x96xf32>
    %45 = math.exp %44 : vector<24x96xf32>
    %cst_26 = arith.constant 1.000000e+00 : f32
    %46 = vector.broadcast %cst_26 : f32 to vector<24x96xf32>
    %47 = arith.addf %46, %45 : vector<24x96xf32>
    %48 = tpu.reciprocal %47 {approx = true} : vector<24x96xf32> -> vector<24x96xf32>
    %49 = arith.mulf %42, %48 : vector<24x96xf32>
    %50 = vector.broadcast %12 : vector<24x1xf32> to vector<24x96xf32>
    %51 = arith.mulf %49, %50 : vector<24x96xf32>
    %c24_i32 = arith.constant 24 : i32
    %52 = arith.muli %arg0, %c24_i32 : i32
    %53 = tpu.iota {dimensions = array<i32: 0>} : vector<24x1xi32>
    %54 = vector.broadcast %52 : i32 to vector<24x1xi32>
    %55 = arith.addi %54, %53 : vector<24x1xi32>
    %c20_i32 = arith.constant 20 : i32
    %56 = vector.broadcast %c20_i32 : i32 to vector<24x1xi32>
    %57 = arith.cmpi slt, %55, %56 : vector<24x1xi32>
    %58 = arith.extui %57 : vector<24x1xi1> to vector<24x1xi32>
    %59 = arith.sitofp %58 : vector<24x1xi32> to vector<24x1xf32>
    %60 = vector.broadcast %59 : vector<24x1xf32> to vector<24x96xf32>
    %61 = arith.mulf %51, %60 : vector<24x96xf32>
    %c0_27 = arith.constant 0 : index
    %c0_28 = arith.constant 0 : index
    %62 = vector.load %arg9[%c0_27, %c0_28] : memref<24x96xf32, #tpu.memory_space<vmem>>, vector<24x96xf32>
    tpu.vector_store %arg9[%c0_27, %c0_28], %61 {strides = array<i32>} : memref<24x96xf32, #tpu.memory_space<vmem>>, vector<24x96xf32>,
    return
  }
  func.func @transform_0(%arg0: i32) -> (i32, i32) {
    %c0_i32 = arith.constant 0 : i32
    %c0_i32_0 = arith.constant 0 : i32
    return %arg0, %c0_i32 : i32, i32
  }
  func.func @transform_1(%arg0: i32) -> (i32, i32) {
    %c0_i32 = arith.constant 0 : i32
    %c0_i32_0 = arith.constant 0 : i32
    return %arg0, %c0_i32 : i32, i32
  }
  func.func @transform_2(%arg0: i32) -> (i32, i32) {
    %c0_i32 = arith.constant 0 : i32
    %c0_i32_0 = arith.constant 0 : i32
    %c0_i32_1 = arith.constant 0 : i32
    return %c0_i32, %c0_i32_0 : i32, i32
  }
  func.func @transform_3(%arg0: i32) -> (i32, i32) {
    %c0_i32 = arith.constant 0 : i32
    %c0_i32_0 = arith.constant 0 : i32
    %c0_i32_1 = arith.constant 0 : i32
    return %c0_i32, %c0_i32_0 : i32, i32
  }
  func.func @transform_4(%arg0: i32) -> (i32, i32) {
    %c0_i32 = arith.constant 0 : i32
    %c0_i32_0 = arith.constant 0 : i32
    %c0_i32_1 = arith.constant 0 : i32
    return %c0_i32, %c0_i32_0 : i32, i32
  }
  func.func @transform_5(%arg0: i32) -> (i32, i32) {
    %c0_i32 = arith.constant 0 : i32
    %c0_i32_0 = arith.constant 0 : i32
    %c0_i32_1 = arith.constant 0 : i32
    return %c0_i32, %c0_i32_0 : i32, i32
  }
  func.func @transform_6(%arg0: i32) -> (i32, i32) {
    %c0_i32 = arith.constant 0 : i32
    %c0_i32_0 = arith.constant 0 : i32
    %c0_i32_1 = arith.constant 0 : i32
    return %c0_i32, %c0_i32_0 : i32, i32
  }
  func.func @transform_7(%arg0: i32) -> (i32, i32) {
    %c0_i32 = arith.constant 0 : i32
    %c0_i32_0 = arith.constant 0 : i32
    %c0_i32_1 = arith.constant 0 : i32
    return %c0_i32, %c0_i32_0 : i32, i32
  }
  func.func @transform_8(%arg0: i32) -> (i32, i32) {
    %c0_i32 = arith.constant 0 : i32
    %c0_i32_0 = arith.constant 0 : i32
    return %arg0, %c0_i32 : i32, i32
  }
}

</mosaic_0001>

<bundles_post_ra>
// kernel: tpu_custom_call.1
= control target key start
LH: loop header
LB: loop body
LE: loop exit
PB: predicated region body
PF: predicated region fallthrough
CT: control target
= control target key end

     0   :  { %13 = vsyncpa [#allocation3], 0  ;;  %s1457_s0 = inlined_call_operand.vmem [shape: f32[24,1], index: 0, kind: input, shape index: {}]   ;;  %s1458_s1 = inlined_call_operand.vmem [shape: f32[24,16], index: 1, kind: input, shape index: {}]   ;;  %s1459_s2 = inlined_call_operand.hbm [shape: f32[16,32], index: 2, kind: input, shape index: {}]   ;;  %s1460_s3 = inlined_call_operand.vmem [shape: f32[1,32], index: 3, kind: input, shape index: {}]   ;;  %s1461_s4 = inlined_call_operand.hbm [shape: f32[32,64], index: 4, kind: input, shape index: {}]   ;;  %s1462_s5 = inlined_call_operand.vmem [shape: f32[1,64], index: 5, kind: input, shape index: {}]   ;;  %s1463_s6 = inlined_call_operand.vmem [shape: f32[64,96], index: 6, kind: input, shape index: {}]   ;;  %s1464_s7 = inlined_call_operand.vmem [shape: f32[1,96], index: 7, kind: input, shape index: {}]   ;;  %s1465_s8 = inlined_call_operand.hbm [shape: f32[24,96], index: 8, kind: output, shape index: {}]  }
   0x1   :  { %14 = vsyncpa [#allocation6], 0 }
   0x2   :  { %15 = vsyncpa [#allocation4], 0  ;;  %s1062_s27 = smov [#allocation2]  }
   0x3   :  { %s25_s28 = sshll.u32 %s1062_s27, 4  ;;  %s26_s28 = int_to_ptr.vmem [resolvable:$true] %s25_s28 }
   0x4   :  { %s1004_s29 = scalar_lea.vmem %s26_s28, 256  ;;  %p1009_p1 = scmp.lt.s32.totalorder %s26_s28, %s26_s28 }
   0x5   :  { %p1005_p0 = scmp.ne.s32.totalorder %s26_s28, %s1004_s29  ;;  %p1010_p2 = scmp.lt.s32.totalorder %s1004_s29, %s1004_s29 }
   0x7   :  { %p1011_p3 = por %p1010_p2, %p1009_p1 }
   0x9   :  { %p1012_p4 = pnand %p1011_p3, %p1005_p0 }
   0xb   :  { %1015 = shalt.err (!%p1012_p4)
}
   0xc   :  { %s1063_s30 = smov 128   ;;  %s1064_s9 = smov 8  }
   0xd   :  { %31 = dma.hbm_to_vmem [thread:$0]  %s1459_s2, 256, %s26_s28, [#allocation3], %s1063_s30, %s1063_s30, %s1064_s9  }
   0xe   :  { %s1065_s12 = smov [#allocation5]  }
   0xf   :  { %s39_s13 = sshll.u32 %s1065_s12, 4  ;;  %s40_s13 = int_to_ptr.vmem [resolvable:$true] %s39_s13 }
  0x10   :  { %s1024_s14 = scalar_lea.vmem %s40_s13, 512  ;;  %p1029_p6 = scmp.lt.s32.totalorder %s40_s13, %s40_s13 }
  0x11   :  { %p1025_p5 = scmp.ne.s32.totalorder %s40_s13, %s1024_s14  ;;  %p1030_p7 = scmp.lt.s32.totalorder %s1024_s14, %s1024_s14 }
  0x13   :  { %p1031_p8 = por %p1030_p7, %p1029_p6 }
  0x15   :  { %p1032_p9 = pnand %p1031_p8, %p1025_p5 }
  0x17   :  { %1035 = shalt.err (!%p1032_p9)
}
  0x18   :  { %45 = dma.hbm_to_vmem [thread:$0]  %s1461_s4, 512, %s40_s13, [#allocation6], %s1063_s30, %s1063_s30, %s1064_s9  }
  0x19   :  { %1056 = dma.done.wait [#allocation3], 256  }
  0x1a   :  { %1057 = vsyncadd [#allocation3], 4294967040 }
  0x1b   :  { %1058 = dma.done.wait [#allocation6], 512  }
  0x1c   :  { %1059 = vsyncadd [#allocation6], 4294966784  ;;  %v1066_v0 = vmov 0.0   ;;  %vm1067_vm0 = vmmov 0   ;;  %v395_v1 = vld [vmem:[#allocation2 + $0x8] sm:$0xff]  ;;  %v394_v2 = vld [vmem:[#allocation2] sm:$0xff] }
  0x1d   :  { %865 = vmatprep.subr.mxu1 %v1066_v0  ;;  %869 = vmatprep.mubr.msk.f32.mxu1 %vm1067_vm0, %v1066_v0  ;;  %v391_v3 = vld [vmem:[%s1458_s1] sm:$0xff]  ;;  %vm403_vm1 = vcmask 130048   ;;  %v392_v4 = vld [vmem:[%s1458_s1 + $0x8] sm:$0xff]  ;;  %v393_v5 = vld [vmem:[%s1458_s1 + $0x10] sm:$0xff]  ;;  %vm522_vm2 = vcmask 261120   ;;  %v1068_v47 = vmov 0  }
  0x1e   :  { %895 = vmatprep.subr.mxu0 %v1066_v0  ;;  %911 = vmatprep.mubr.msk.f32.mxu0 %vm1067_vm0, %v1066_v0  ;;  %v514_v6 = vld [vmem:[#allocation5 + $0x18] sm:$0xff]  ;;  %v513_v7 = vld [vmem:[#allocation5 + $0x10] sm:$0xff]  ;;  %v512_v8 = vld [vmem:[#allocation5 + $0x8] sm:$0xff] }
  0x1f   :  { %866 = vmatpush3.msra.mxu1 %v395_v1  ;;  %v511_v9 = vld [vmem:[#allocation5] sm:$0xff]  ;;  %v829_v10 = vld [vmem:[%s1460_s3] ss:$0 sm:$0xff]  ;;  %v637_v38 = vld [vmem:[%s1463_s6 + $0x38] sm:$0xff]  ;;  %946 = vset.pattern.permute.xlu0 %v1068_v47 }
  0x20   :  { %867 = vmatprep.subr.mxu1 %v1066_v0  ;;  %896 = vmatpush3.msra.mxu0 %v637_v38  ;;  %v636_v39 = vld [vmem:[%s1463_s6 + $0x30] sm:$0xff]  ;;  %v635_v40 = vld [vmem:[%s1463_s6 + $0x28] sm:$0xff]  ;;  %v634_v41 = vld [vmem:[%s1463_s6 + $0x20] sm:$0xff] }
  0x21   :  { %868 = vmatpush3.msra.mxu1 %v394_v2  ;;  %897 = vmatprep.subr.mxu0 %v1066_v0  ;;  %v633_v42 = vld [vmem:[%s1463_s6 + $0x18] sm:$0xff]  ;;  %v632_v43 = vld [vmem:[%s1463_s6 + $0x10] sm:$0xff]  ;;  %v631_v44 = vld [vmem:[%s1463_s6 + $0x8] sm:$0xff] }
  0x22   :  { %870 = vmatmul.mubr.msk.f32.vlgmr.msra.gmra.mxu1 %vm403_vm1, %v391_v3  ;;  %878 = vmatprep.subr.mxu1 %v1066_v0  ;;  %v630_v45 = vld [vmem:[%s1463_s6] sm:$0xff]  ;;  %v1200_v46 = vld [vmem:[%s1457_s0 + $0x10] sm:$0xff]  ;;  %v1215_v52 = vld [vmem:[%s1457_s0 + $0x8] sm:$0xff] }
  0x23   :  { %872 = vmatprep.mubr.msk.f32.mxu1 %vm1067_vm0, %v1066_v0  ;;  %879 = vmatpush3.msra.mxu1 %v514_v6  ;;  %v1203_v48 = vmul.f32 0.62831855, %v1200_v46  ;;  %v1208_v49 = vld [vmem:[%s1457_s0] sm:$0xff]  ;;  %v1221_v54 = vmul.f32 0.62831855, %v1215_v52 }
  0x24   :  { %880 = vmatprep.subr.mxu1 %v1066_v0  ;;  %898 = vmatpush3.msra.mxu0 %v636_v39  ;;  %v1218_v53 = vmul.f32 0.62831855, %v1208_v49 }
  0x25   :  { %881 = vmatpush3.msra.mxu1 %v513_v7  ;;  %899 = vmatprep.subr.mxu0 %v1066_v0  ;;  %v270_v50 = vand.u32 2147483647, %v1203_v48  ;;  %v273_v51 = vand.u32 2139095040, %v1203_v48  ;;  %v170_v62 = vand.u32 2139095040, %v1221_v54 }
  0x26   :  { %873 = vmatmul.mubr.msk.f32.gmra.mxu1 %vm403_vm1, %v392_v4  ;;  %882 = vmatprep.subr.mxu1 %v1066_v0  ;;  %v64_v57 = vand.u32 2147483647, %v1218_v53  ;;  %v67_v58 = vand.u32 2139095040, %v1218_v53 }
  0x27   :  { %875 = vmatprep.mubr.msk.f32.mxu1 %vm1067_vm0, %v1066_v0  ;;  %883 = vmatpush3.msra.mxu1 %v512_v8  ;;  %v274_v55 = vshrl.u32 %v273_v51, 23  ;;  %v277_v56 = vand.u32 8388607, %v270_v50  ;;  %v171_v4 = vshrl.u32 %v170_v62, 23 }
  0x28   :  { %884 = vmatprep.subr.mxu1 %v1066_v0  ;;  %900 = vmatpush3.msra.mxu0 %v635_v40  ;;  %v68_v60 = vshrl.u32 %v67_v58, 23  ;;  %v71_v61 = vand.u32 8388607, %v64_v57 }
  0x29   :  { %885 = vmatpush3.msra.mxu1 %v511_v9  ;;  %901 = vmatprep.subr.mxu0 %v1066_v0  ;;  %v822_v59 = vadd.s32 4294967169, %v274_v55  ;;  %v278_v1 = vor.u32 8388608, %v277_v56 }
  0x2a   :  { %876 = vmatmul.mubr.msk.f32.gmra.mxu1 %vm403_vm1, %v393_v5  ;;  %902 = vmatpush3.msra.mxu0 %v634_v41  ;;  %v814_v2 = vadd.s32 4294967169, %v68_v60  ;;  %v72_v3 = vor.u32 8388608, %v71_v61 }
  0x2b   :  { %886 = vmatprep.mubr.msk.f32.mxu1 %vm1067_vm0, %v1066_v0  ;;  %903 = vmatprep.subr.mxu0 %v1066_v0  ;;  %v280_v63 = vadd.s32 1, %v822_v59  ;;  %v1230_v9 = vshll.u32 %v278_v1, 8 }
  0x2c   :  { %904 = vmatpush3.msra.mxu0 %v633_v42  ;;  %947 = vset.pattern.permute.xlu1 %v1068_v47  ;;  %v74_v6 = vadd.s32 1, %v814_v2 }
  0x2d   :  { %905 = vmatprep.subr.mxu0 %v1066_v0  ;;  %vm281_vm3 = vcmp.gt.s32.totalorder %v280_v63, 0 }
  0x2e   :  { %906 = vmatpush3.msra.mxu0 %v632_v43  ;;  %v282_v5 = vsel %vm281_vm3, %v280_v63, 0  ;;  %vm75_vm4 = vcmp.gt.s32.totalorder %v74_v6, 0 }
  0x2f   :  { %907 = vmatprep.subr.mxu0 %v1066_v0  ;;  %v283_v7 = vshrl.u32 %v282_v5, 5  ;;  %v284_v8 = vand.u32 31, %v282_v5 }
  0x30   :  { %908 = vmatpush3.msra.mxu0 %v631_v44 }
  0x31   :  { %909 = vmatprep.subr.mxu0 %v1066_v0  ;;  %vm302_vm5 = vcmp.lt.s32.totalorder %v283_v7, 1  ;;  %vm303_vm6 = vcmp.lt.s32.totalorder %v283_v7, 2  ;;  %vm304_vm7 = vcmp.lt.s32.totalorder %v283_v7, 3  ;;  %vm305_vm8 = vcmp.lt.s32.totalorder %v283_v7, 4 }
  0x32   :  { %910 = vmatpush3.msra.mxu0 %v630_v45 }
  0xe2   :  { %v479_v11 = vpop.f32.mrf.mxu1 }
  0xe3   :  { %v480_v12 = vadd.f32 %v829_v10, %v479_v11  ;;  %v1234_v11 = vadd.s32 4294967169, %v171_v4 }
  0xe4   :  { %v871_v13 = vpop.f32.mrf.mxu1 }
  0xe5   :  { %v493_v14 = vsub.f32 0.0, %v480_v12  ;;  %v1069_v13 = vmov 683565275  }
  0xe6   :  { %v484_v15 = vpop.f32.mrf.mxu1 }
  0xe7   :  { %v496_v16 = vmul.f32 1.442695, %v493_v14  ;;  %v485_v17 = vadd.f32 %v829_v10, %v484_v15  ;;  %v287_v14 = vshll.u32 %v1069_v13, %v284_v8  ;;  %v1070_v15 = vmov 2475754826  }
  0xe8   :  { %v874_v18 = vpop.f32.mrf.mxu1 }
  0xe9   :  { %948 = vpow2.f32 %v496_v16  ;;  %v494_v19 = vsub.f32 0.0, %v485_v17  ;;  %v290_v16 = vshll.u32 %v1070_v15, %v284_v8 }
  0xea   :  { %v489_v20 = vpop.f32.mrf.mxu1 }
  0xeb   :  { %v498_v21 = vmul.f32 1.442695, %v494_v19  ;;  %v490_v22 = vadd.f32 %v829_v10, %v489_v20  ;;  %v1232_v10 = vshll.u32 %v72_v3, 8  ;;  %v1072_v19 = vmov 2102212464  }
  0xec   :  { %v877_v23 = vpop.f32.mrf.mxu1  ;;  %v296_v20 = vshll.u32 %v1072_v19, %v284_v8 }
  0xed   :  { %950 = vpow2.f32 %v498_v21  ;;  %v495_v24 = vsub.f32 0.0, %v490_v22  ;;  %v1073_v21 = vmov 920167782  }
  0xef   :  { %v500_v25 = vmul.f32 1.442695, %v495_v24 }
  0xf1   :  { %952 = vpow2.f32 %v500_v25 }
  0xf6   :  { %v949_v26 = vpop.eup %948 }
  0xf7   :  { %v502_v27 = vadd.f32 1.0, %v949_v26 }
  0xf9   :  { %954 = vrcp.f32 %v502_v27 }
  0xfa   :  { %v951_v28 = vpop.eup %950 }
  0xfb   :  { %v503_v29 = vadd.f32 1.0, %v951_v28  ;;  %v1074_v28 = vmov 1326507024  }
  0xfd   :  { %956 = vrcp.f32 %v503_v29 }
  0xfe   :  { %v953_v30 = vpop.eup %952 }
  0xff   :  { %v504_v31 = vadd.f32 1.0, %v953_v30 }
 0x101   :  { %958 = vrcp.f32 %v504_v31 }
 0x106   :  { %v955_v32 = vpop.eup %954 }
 0x107   :  { %v508_v33 = vmul.f32 %v955_v32, %v480_v12  ;;  %v285_v12 = vsub.s32 32, %v284_v8 }
 0x109   :  { %887 = vmatmul.mubr.msk.f32.vlgmr.msra.gmra.mxu1 %vm522_vm2, %v508_v33  ;;  %v286_v23 = vshrl.u32 %v1069_v13, %v285_v12  ;;  %v288_v24 = vshrl.u32 %v1070_v15, %v285_v12  ;;  %v294_v26 = vshrl.u32 %v1072_v19, %v285_v12  ;;  %v297_v27 = vshrl.u32 %v1073_v21, %v285_v12 }
 0x10a   :  { %v957_v34 = vpop.eup %956  ;;  %889 = vmatprep.mubr.msk.f32.mxu1 %vm1067_vm0, %v1066_v0  ;;  %v300_v29 = vshrl.u32 %v1074_v28, %v285_v12  ;;  %v76_v33 = vsel %vm75_vm4, %v74_v6, 0 }
 0x10b   :  { %v509_v35 = vmul.f32 %v957_v34, %v485_v17  ;;  %v1071_v17 = vmov 2131351028   ;;  %v289_v30 = vor.u32 %v288_v24, %v287_v14  ;;  %v298_v34 = vor.u32 %v297_v27, %v296_v20 }
 0x10c   :  { %v293_v18 = vshll.u32 %v1071_v17, %v284_v8  ;;  %v291_v25 = vshrl.u32 %v1071_v17, %v285_v12 }
 0x10d   :  { %890 = vmatmul.mubr.msk.f32.gmra.mxu1 %vm522_vm2, %v509_v35  ;;  %v306_v38 = vsel %vm302_vm5, %v286_v23, %v289_v30  ;;  %v311_v43 = vsel %vm305_vm8, %v298_v34, 920167782  ;;  %v177_v23 = vadd.s32 1, %v1234_v11 }
 0x10e   :  { %v959_v36 = vpop.eup %958  ;;  %892 = vmatprep.mubr.msk.f32.mxu1 %vm1067_vm0, %v1066_v0  ;;  %v292_v31 = vor.u32 %v291_v25, %v290_v16  ;;  %v295_v32 = vor.u32 %v294_v26, %v293_v18 }
 0x10f   :  { %v510_v37 = vmul.f32 %v959_v36, %v490_v22  ;;  %v299_v22 = vshll.u32 %v1073_v21, %v284_v8  ;;  %v77_v36 = vshrl.u32 %v76_v33, 5  ;;  %vm178_vm14 = vcmp.gt.s32.totalorder %v177_v23, 0 }
 0x110   :  { %v307_v39 = vsel %vm305_vm8, %v295_v32, 2102212464  ;;  %v310_v40 = vsel %vm302_vm5, %v289_v30, %v292_v31  ;;  %v314_v41 = vsel %vm302_vm5, %v292_v31, %v295_v32  ;;  %v312_v51 = vsel %vm304_vm7, %v295_v32, %v311_v43 }
 0x111   :  { %893 = vmatmul.mubr.msk.f32.gmra.mxu1 %vm522_vm2, %v510_v37  ;;  %v301_v35 = vor.u32 %v300_v29, %v299_v22  ;;  %v78_v37 = vand.u32 31, %v76_v33  ;;  %v308_v42 = vsel %vm304_vm7, %v292_v31, %v307_v39  ;;  %v313_v58 = vsel %vm303_vm6, %v310_v40, %v312_v51 }
 0x112   :  { %v309_v47 = vsel %vm303_vm6, %v306_v38, %v308_v42  ;;  %v1265_v1 = vmul.u32.u64.low %v1230_v9, %v313_v58  ;;  %v1266_v2 = vmul.u32.u64.high %v1230_v9, %v313_v58, %v1265_v1  ;;  %vm96_vm9 = vcmp.lt.s32.totalorder %v77_v36, 1 }
 0x113   :  { %v315_v44 = vsel %vm305_vm8, %v301_v35, 1326507024  ;;  %v79_v45 = vsub.s32 32, %v78_v37  ;;  %v81_v56 = vshll.u32 %v1069_v13, %v78_v37  ;;  %v325_v60 = vmul.u32 %v1230_v9, %v309_v47 }
 0x114   :  { %v316_v55 = vsel %vm304_vm7, %v298_v34, %v315_v44  ;;  %v84_v4 = vshll.u32 %v1070_v15, %v78_v37  ;;  %v87_v6 = vshll.u32 %v1071_v17, %v78_v37  ;;  %v90_v8 = vshll.u32 %v1072_v19, %v78_v37 }
 0x115   :  { %v317_v59 = vsel %vm303_vm6, %v314_v41, %v316_v55  ;;  %v80_v61 = vshrl.u32 %v1069_v13, %v79_v45  ;;  %v82_v3 = vshrl.u32 %v1070_v15, %v79_v45  ;;  %v85_v5 = vshrl.u32 %v1071_v17, %v79_v45 }
 0x116   :  { %v1261_v62 = vmul.u32.u64.low %v1230_v9, %v317_v59  ;;  %v1262_v63 = vmul.u32.u64.high %v1230_v9, %v317_v59, %v1261_v62  ;;  %v88_v7 = vshrl.u32 %v1072_v19, %v79_v45  ;;  %v91_v12 = vshrl.u32 %v1073_v21, %v79_v45 }
 0x117   :  { %v93_v14 = vshll.u32 %v1073_v21, %v78_v37  ;;  %v83_v16 = vor.u32 %v82_v3, %v81_v56  ;;  %v86_v9 = vor.u32 %v85_v5, %v84_v4  ;;  %v94_v18 = vshrl.u32 %v1074_v28, %v79_v45 }
 0x118   :  { %vm327_vm10 = vc.u32 %v1262_v63, %v1265_v1  ;;  %v328_v20 = vadd.s32 1, %v1266_v2  ;;  %v89_v22 = vor.u32 %v88_v7, %v87_v6  ;;  %v92_v24 = vor.u32 %v91_v12, %v90_v8 }
 0x119   :  { %v95_v25 = vor.u32 %v94_v18, %v93_v14  ;;  %vm97_vm11 = vcmp.lt.s32.totalorder %v77_v36, 2  ;;  %vm98_vm12 = vcmp.lt.s32.totalorder %v77_v36, 3  ;;  %vm99_vm13 = vcmp.lt.s32.totalorder %v77_v36, 4 }
 0x11a   :  { %v329_v26 = vsel %vm327_vm10, %v328_v20, %v1266_v2  ;;  %v100_v27 = vsel %vm96_vm9, %v80_v61, %v83_v16  ;;  %v104_v29 = vsel %vm96_vm9, %v83_v16, %v86_v9  ;;  %v101_v31 = vsel %vm99_vm13, %v89_v22, 2102212464 }
 0x11b   :  { %v330_v30 = vadd.s32 %v329_v26, %v325_v60  ;;  %v105_v32 = vsel %vm99_vm13, %v92_v24, 920167782  ;;  %v108_v33 = vsel %vm96_vm9, %v86_v9, %v89_v22  ;;  %v102_v34 = vsel %vm98_vm12, %v86_v9, %v101_v31 }
 0x11c   :  { %v106_v35 = vsel %vm98_vm12, %v89_v22, %v105_v32  ;;  %v109_v37 = vsel %vm99_vm13, %v95_v25, 1326507024  ;;  %v167_v40 = vand.u32 2147483647, %v1221_v54  ;;  %v103_v41 = vsel %vm97_vm11, %v100_v27, %v102_v34 }
 0x11d   :  { %v331_v11 = vadd.s32 536870912, %v330_v30  ;;  %v107_v38 = vsel %vm97_vm11, %v104_v29, %v106_v35  ;;  %v110_v39 = vsel %vm98_vm12, %v92_v24, %v109_v37  ;;  %v179_v55 = vsel %vm178_vm14, %v177_v23, 0 }
 0x11e   :  { %v111_v42 = vsel %vm97_vm11, %v108_v33, %v110_v39  ;;  %v1291_v43 = vmul.u32.u64.low %v1232_v10, %v107_v38  ;;  %v1292_v44 = vmul.u32.u64.high %v1232_v10, %v107_v38, %v1291_v43  ;;  %v181_v56 = vand.u32 31, %v179_v55 }
 0x11f   :  { %v1295_v45 = vshrl.u32 %v331_v11, 30  ;;  %v1298_v47 = vmul.u32.u64.low %v1232_v10, %v111_v42  ;;  %v1299_v51 = vmul.u32.u64.high %v1232_v10, %v111_v42, %v1298_v47  ;;  %v119_v59 = vmul.u32 %v1232_v10, %v103_v41 }
 0x120   :  { %v174_v36 = vand.u32 8388607, %v167_v40  ;;  %v122_v60 = vadd.s32 1, %v1292_v44  ;;  %v182_v62 = vsub.s32 32, %v181_v56  ;;  %v180_v6 = vshrl.u32 %v179_v55, 5 }
 0x121   :  { %v333_v58 = vshll.u32 %v1295_v45, 30  ;;  %vm121_vm15 = vc.u32 %v1299_v51, %v1291_v43  ;;  %v184_v7 = vshll.u32 %v1069_v13, %v181_v56  ;;  %v193_v10 = vshll.u32 %v1072_v19, %v181_v56 }
 0x122   :  { %v123_v2 = vsel %vm121_vm15, %v122_v60, %v1292_v44  ;;  %v175_v5 = vor.u32 8388608, %v174_v36  ;;  %v185_v12 = vshrl.u32 %v1070_v15, %v182_v62  ;;  %v187_v14 = vshll.u32 %v1070_v15, %v181_v56 }
 0x123   :  { %v334_v61 = vsub.s32 %v330_v30, %v333_v58  ;;  %v124_v4 = vadd.s32 %v123_v2, %v119_v59  ;;  %v188_v16 = vshrl.u32 %v1071_v17, %v182_v62  ;;  %v190_v18 = vshll.u32 %v1071_v17, %v181_v56 }
 0x124   :  { %v191_v20 = vshrl.u32 %v1072_v19, %v182_v62  ;;  %v194_v22 = vshrl.u32 %v1073_v21, %v182_v62  ;;  %v196_v24 = vshll.u32 %v1073_v21, %v181_v56  ;;  %v197_v25 = vshrl.u32 %v1074_v28, %v182_v62 }
 0x125   :  { %v336_v3 = vsub.s32 0, %v334_v61  ;;  %v125_v9 = vadd.s32 536870912, %v124_v4  ;;  %v1319_v26 = vshll.u32 %v175_v5, 8  ;;  %v326_v27 = vadd.s32 %v1265_v1, %v1262_v63 }
 0x126   :  { %v183_v29 = vshrl.u32 %v1069_v13, %v182_v62  ;;  %v195_v30 = vor.u32 %v194_v22, %v193_v10  ;;  %v186_v31 = vor.u32 %v185_v12, %v184_v7  ;;  %v189_v19 = vor.u32 %v188_v16, %v187_v14 }
 0x127   :  { %v823_v8 = vmin.u32 %v336_v3, %v334_v61  ;;  %v1323_v15 = vshrl.u32 %v125_v9, 30  ;;  %vm202_vm1 = vcmp.lt.s32.totalorder %v180_v6, 4  ;;  %v192_v33 = vor.u32 %v191_v20, %v190_v18 }
 0x128   :  { %v198_v21 = vor.u32 %v197_v25, %v196_v24  ;;  %vm199_vm2 = vcmp.lt.s32.totalorder %v180_v6, 1  ;;  %vm200_vm4 = vcmp.lt.s32.totalorder %v180_v6, 2  ;;  %vm201_vm5 = vcmp.lt.s32.totalorder %v180_v6, 3 }
 0x129   :  { %v338_v23 = vclz %v823_v8  ;;  %v127_v32 = vshll.u32 %v1323_v15, 30  ;;  %v208_v28 = vsel %vm202_vm1, %v195_v30, 920167782  ;;  %v203_v34 = vsel %vm199_vm2, %v183_v29, %v186_v31 }
 0x12a   :  { %v204_v13 = vsel %vm202_vm1, %v192_v33, 2102212464  ;;  %v207_v38 = vsel %vm199_vm2, %v186_v31, %v189_v19  ;;  %v209_v41 = vsel %vm201_vm5, %v192_v33, %v208_v28  ;;  %v211_v42 = vsel %vm199_vm2, %v189_v19, %v192_v33 }
 0x12b   :  { %v824_v17 = vadd.s32 4294967294, %v338_v23  ;;  %v128_v1 = vsub.s32 %v124_v4, %v127_v32  ;;  %v212_v44 = vsel %vm202_vm1, %v198_v21, 1326507024  ;;  %v205_v56 = vsel %vm201_vm5, %v189_v19, %v204_v13 }
 0x12c   :  { %v213_v58 = vsel %vm201_vm5, %v195_v30, %v212_v44  ;;  %v210_v36 = vsel %vm200_vm4, %v207_v38, %v209_v41  ;;  %v206_v3 = vsel %vm200_vm4, %v203_v34, %v205_v56  ;;  %v120_v9 = vadd.s32 %v1291_v43, %v1299_v51 }
 0x12d   :  { %vm825_vm3 = vcmp.lt.s32.totalorder %v824_v17, 0  ;;  %v130_v39 = vsub.s32 0, %v128_v1  ;;  %v1341_v8 = vmul.u32.u64.low %v1319_v26, %v210_v36  ;;  %v1342_v12 = vmul.u32.u64.high %v1319_v26, %v210_v36, %v1341_v8 }
 0x12e   :  { %v341_v63 = vsel %vm825_vm3, 0, %v824_v17  ;;  %v222_v6 = vmul.u32 %v1319_v26, %v206_v3  ;;  %vm272_vm8 = vcmp.lt.s32.totalorder %v1203_v48, 0  ;;  %vm1354_vm9 = vcmp.le.f32.partialorder %v270_v50, 0.7853982 }
 0x12f   :  { %v342_v35 = vsub.s32 32, %v341_v63  ;;  %v343_v37 = vshll.u32 %v334_v61, %v341_v63  ;;  %v346_v11 = vsub.s32 4294967266, %v341_v63  ;;  %v815_v59 = vmin.u32 %v130_v39, %v128_v1 }
 0x130   :  { %v214_v61 = vsel %vm200_vm4, %v211_v42, %v213_v58  ;;  %v225_v22 = vadd.s32 1, %v1342_v12  ;;  %v356_v31 = vsub.s32 4, %v1295_v45  ;;  %vm66_vm10 = vcmp.lt.s32.totalorder %v1218_v53, 0 }
 0x131   :  { %v344_v47 = vshrl.u32 %v326_v27, %v342_v35  ;;  %v347_v55 = vadd.s32 127, %v346_v11  ;;  %v132_v2 = vclz %v815_v59  ;;  %vm1376_vm11 = vcmp.le.f32.partialorder %v64_v57, 0.7853982  ;;  %v833_v57 = vld [vmem:[%s1462_s5] ss:$0 sm:$0xff] }
 0x132   :  { %v1337_v4 = vmul.u32.u64.low %v1319_v26, %v214_v61  ;;  %v1338_v5 = vmul.u32.u64.high %v1319_v26, %v214_v61, %v1337_v4  ;;  %v150_v44 = vsub.s32 4, %v1323_v15  ;;  %vm362_vm13 = vweird.f32 %v1203_v48 }
 0x133   :  { %v345_v60 = vor.u32 %v344_v47, %v343_v37  ;;  %v348_v62 = vshll.u32 %v347_v55, 23  ;;  %v816_v14 = vadd.s32 4294967294, %v132_v2  ;;  %vm381_vm2 = vcmp.lt.f32.partialorder %v1200_v46, 5.0 }
 0x134   :  { %vm224_vm7 = vc.u32 %v1338_v5, %v1341_v8  ;;  %v151_v36 = vsel %vm66_vm10, %v150_v44, %v1323_v15 }
 0x135   :  { %v349_v7 = vor.u32 4788187, %v348_v62  ;;  %v352_v10 = vcvt.s32.f32 %v345_v60  ;;  %vm817_vm6 = vcmp.lt.s32.totalorder %v816_v14, 0  ;;  %v226_v51 = vsel %vm224_vm7, %v225_v22, %v1342_v12 }
 0x136   :  { %v135_v20 = vsel %vm817_vm6, 0, %v816_v14  ;;  %v227_v30 = vadd.s32 %v226_v51, %v222_v6  ;;  %v153_v15 = vsel %vm1376_vm11, 0, %v151_v36  ;;  %vm156_vm6 = vweird.f32 %v1218_v53 }
 0x137   :  { %v350_v16 = vand.u32 2147483647, %v349_v7  ;;  %v136_v23 = vsub.s32 32, %v135_v20  ;;  %v137_v24 = vshll.u32 %v128_v1, %v135_v20  ;;  %v140_v25 = vsub.s32 4294967266, %v135_v20 }
 0x138   :  { %v228_v33 = vadd.s32 536870912, %v227_v30  ;;  %v357_v1 = vsel %vm272_vm8, %v356_v31, %v1295_v45  ;;  %v223_v7 = vadd.s32 %v1341_v8, %v1338_v5  ;;  %vm169_vm7 = vcmp.lt.s32.totalorder %v1221_v54, 0 }
 0x139   :  { %v353_v18 = vmul.f32 %v352_v10, %v350_v16  ;;  %v138_v26 = vshrl.u32 %v120_v9, %v136_v23  ;;  %v141_v29 = vadd.s32 127, %v140_v25  ;;  %v359_v11 = vsel %vm1354_vm9, 0, %v357_v1 }
 0x13a   :  { %v1365_v63 = vshrl.u32 %v228_v33, 30  ;;  %v363_v42 = vand.u32 3, %v359_v11 }
 0x13b   :  { %v354_v43 = vxor.u32 2147483648, %v353_v18  ;;  %v139_v32 = vor.u32 %v138_v26, %v137_v24  ;;  %v142_v50 = vshll.u32 %v141_v29, 23  ;;  %v157_v26 = vand.u32 3, %v153_v15 }
 0x13c   :  { %v230_v13 = vshll.u32 %v1365_v63, 30  ;;  %vm368_vm12 = vcmp.eq.s32.totalorder %v363_v42, 2  ;;  %vm365_vm14 = vcmp.eq.s32.totalorder %v363_v42, 0  ;;  %vm364_vm15 = vcmp.lt.s32.totalorder %v363_v42, 2 }
 0x13d   :  { %v355_v17 = vsel %vm272_vm8, %v354_v43, %v353_v18  ;;  %v143_v21 = vor.u32 4788187, %v142_v50  ;;  %v146_v28 = vcvt.s32.f32 %v139_v32  ;;  %vm162_vm3 = vcmp.eq.s32.totalorder %v157_v26, 2 }
 0x13e   :  { %v358_v19 = vsel %vm1354_vm9, %v1203_v48, %v355_v17  ;;  %v231_v37 = vsub.s32 %v227_v30, %v230_v13  ;;  %v828_v30 = vsel %vm381_vm2, 1.0, %v1066_v0  ;;  %vm159_vm4 = vcmp.eq.s32.totalorder %v157_v26, 0 }
 0x13f   :  { %960 = vcosq.f32 %v358_v19  ;;  %v144_v34 = vand.u32 2147483647, %v143_v21  ;;  %vm158_vm5 = vcmp.lt.s32.totalorder %v157_v26, 2  ;;  %vm379_vm8 = vcmp.lt.f32.partialorder %v1208_v49, 5.0 }
 0x140   :  { %962 = vsinq.f32 %v358_v19  ;;  %v233_v41 = vsub.s32 0, %v231_v37  ;;  %vm1415_vm9 = vcmp.le.f32.partialorder %v167_v40, 0.7853982 }
 0x141   :  { %v147_v35 = vmul.f32 %v146_v28, %v144_v34 }
 0x142   :  { %v819_v47 = vmin.u32 %v233_v41, %v231_v37 }
 0x143   :  { %v148_v39 = vxor.u32 2147483648, %v147_v35 }
 0x144   :  { %v235_v56 = vclz %v819_v47 }
 0x145   :  { %v149_v45 = vsel %vm66_vm10, %v148_v39, %v147_v35 }
 0x146   :  { %v152_v55 = vsel %vm1376_vm11, %v1218_v53, %v149_v45  ;;  %v820_v60 = vadd.s32 4294967294, %v235_v56  ;;  %v253_v56 = vsub.s32 4, %v1365_v63 }
 0x147   :  { %964 = vcosq.f32 %v152_v55 }
 0x148   :  { %966 = vsinq.f32 %v152_v55  ;;  %vm821_vm1 = vcmp.lt.s32.totalorder %v820_v60, 0 }
 0x149   :  { %v238_v14 = vsel %vm821_vm1, 0, %v820_v60  ;;  %v254_v60 = vsel %vm169_vm7, %v253_v56, %v1365_v63 }
 0x14a   :  { %v239_v6 = vsub.s32 32, %v238_v14  ;;  %v240_v18 = vshll.u32 %v231_v37, %v238_v14  ;;  %v243_v20 = vsub.s32 4294967266, %v238_v14 }
 0x14c   :  { %v961_v58 = vpop.eup %960  ;;  %v241_v25 = vshrl.u32 %v223_v7, %v239_v6  ;;  %v244_v27 = vadd.s32 127, %v243_v20 }
 0x14d   :  { %v963_v62 = vpop.eup %962  ;;  %v369_v2 = vxor.u32 2147483648, %v961_v58 }
 0x14e   :  { %v366_v4 = vxor.u32 2147483648, %v963_v62  ;;  %v242_v17 = vor.u32 %v241_v25, %v240_v18  ;;  %v245_v31 = vshll.u32 %v244_v27, 23 }
 0x14f   :  { %v370_v12 = vsel %vm368_vm12, %v369_v2, %v963_v62 }
 0x150   :  { %v367_v9 = vsel %vm365_vm14, %v961_v58, %v366_v4  ;;  %v246_v33 = vor.u32 4788187, %v245_v31  ;;  %v249_v48 = vcvt.s32.f32 %v242_v17  ;;  %vm259_vm14 = vweird.f32 %v1221_v54 }
 0x151   :  { %v371_v24 = vsel %vm364_vm15, %v367_v9, %v370_v12  ;;  %vm380_vm15 = vcmp.lt.f32.partialorder %v1215_v52, 5.0 }
 0x152   :  { %v372_v8 = vsel %vm362_vm13, nan, %v371_v24  ;;  %v247_v35 = vand.u32 2147483647, %v246_v33  ;;  %vm645_vm13 = vcmask 523264   ;;  %v827_v25 = vsel %vm380_vm15, 1.0, %v1066_v0 }
 0x153   :  { %v375_v51 = vadd.f32 1.0, %v372_v8 }
 0x154   :  { %v965_v21 = vpop.eup %964  ;;  %v250_v39 = vmul.f32 %v249_v48, %v247_v35 }
 0x155   :  { %v378_v46 = vmul.f32 0.5, %v375_v51  ;;  %v967_v34 = vpop.eup %966  ;;  %v163_v13 = vxor.u32 2147483648, %v965_v21 }
 0x156   :  { %v160_v11 = vxor.u32 2147483648, %v967_v34  ;;  %v251_v44 = vxor.u32 2147483648, %v250_v39 }
 0x157   :  { %v390_v1 = vmul.f32 %v828_v30, %v378_v46  ;;  %v164_v38 = vsel %vm162_vm3, %v163_v13, %v967_v34 }
 0x158   :  { %v161_v41 = vsel %vm159_vm4, %v965_v21, %v160_v11  ;;  %v252_v53 = vsel %vm169_vm7, %v251_v44, %v250_v39  ;;  %v772_v39 = vlaneseq }
 0x159   :  { %765 = vperm.xlu0 %946, %v390_v1   ;;  %v165_v42 = vsel %vm158_vm5, %v161_v41, %v164_v38  ;;  %v255_v49 = vsel %vm1415_vm9, %v1221_v54, %v252_v53 }
 0x15a   :  { %v166_v47 = vsel %vm156_vm6, nan, %v165_v42  ;;  %v773_v41 = vshrl.u32 %v772_v39, 7 }
 0x15b   :  { %v373_v55 = vadd.f32 1.0, %v166_v47 }
 0x15c   :  { %v775_v47 = vadd.s32 16, %v773_v41 }
 0x15e   :  { %vm782_vm1 = vcmp.lt.s32.totalorder %v775_v47, 20 }
 0x1c9   :  { %v598_v59 = vpop.f32.mrf.mxu1 }
 0x1ca   :  { %v1392_v61 = vadd.f32 %v833_v57, %v598_v59  ;;  %v376_v59 = vmul.f32 0.5, %v373_v55 }
 0x1cb   :  { %v888_v3 = vpop.f32.mrf.mxu1 }
 0x1cc   :  { %v612_v10 = vsub.f32 0.0, %v1392_v61  ;;  %v256_v3 = vsel %vm1415_vm9, 0, %v254_v60 }
 0x1cd   :  { %v603_v16 = vpop.f32.mrf.mxu1 }
 0x1ce   :  { %v615_v22 = vmul.f32 1.442695, %v612_v10  ;;  %v1400_v23 = vadd.f32 %v833_v57, %v603_v16  ;;  %v260_v10 = vand.u32 3, %v256_v3 }
 0x1cf   :  { %v891_v5 = vpop.f32.mrf.mxu1 }
 0x1d0   :  { %968 = vpow2.f32 %v615_v22  ;;  %v613_v43 = vsub.f32 0.0, %v1400_v23  ;;  %vm265_vm10 = vcmp.eq.s32.totalorder %v260_v10, 2  ;;  %vm262_vm11 = vcmp.eq.s32.totalorder %v260_v10, 0 }
 0x1d1   :  { %v608_v29 = vpop.f32.mrf.mxu1  ;;  %vm261_vm12 = vcmp.lt.s32.totalorder %v260_v10, 2 }
 0x1d2   :  { %v617_v19 = vmul.f32 1.442695, %v613_v43  ;;  %v1407_v32 = vadd.f32 %v833_v57, %v608_v29  ;;  %v826_v57 = vsel %vm379_vm8, 1.0, %v1066_v0  ;;  %v837_v43 = vld [vmem:[%s1464_s7] ss:$0 sm:$0xff]  ;;  %s1075_s7 = smov [#allocation7]  }
 0x1d3   :  { %v894_v50 = vpop.f32.mrf.mxu1  ;;  %v388_v36 = vmul.f32 %v826_v57, %v376_v59  ;;  %s801_s1 = sshll.u32 %s1075_s7, 4  ;;  %s802_s1 = int_to_ptr.vmem [resolvable:$true] %s801_s1 }
 0x1d4   :  { %970 = vpow2.f32 %v617_v19  ;;  %v614_v28 = vsub.f32 0.0, %v1407_v32  ;;  %v766_v38 = vpop.permute.xlu0 %765  ;;  %s1036_s3 = scalar_lea.vmem %s802_s1, 384  ;;  %p1041_p11 = scmp.lt.s32.totalorder %s802_s1, %s802_s1 }
 0x1d5   :  { %755 = vperm.xlu0 %946, %v388_v36   ;;  %p1037_p10 = scmp.ne.s32.totalorder %s802_s1, %s1036_s3  ;;  %p1042_p12 = scmp.lt.s32.totalorder %s1036_s3, %s1036_s3 }
 0x1d6   :  { %v619_v37 = vmul.f32 1.442695, %v614_v28 }
 0x1d7   :  { %p1043_p13 = por %p1042_p12, %p1041_p11 }
 0x1d8   :  { %972 = vpow2.f32 %v619_v37 }
 0x1d9   :  { %974 = vcosq.f32 %v255_v49  ;;  %p1044_p0 = pnand %p1043_p13, %p1037_p10 }
 0x1da   :  { %976 = vsinq.f32 %v255_v49 }
 0x1dd   :  { %v969_v58 = vpop.eup %968 }
 0x1de   :  { %v621_v40 = vadd.f32 1.0, %v969_v58 }
 0x1e0   :  { %978 = vrcp.f32 %v621_v40  ;;  %v841_v40 = vsel %vm782_vm1, 1.0, %v1066_v0 }
 0x1e1   :  { %v971_v62 = vpop.eup %970 }
 0x1e2   :  { %v622_v2 = vadd.f32 1.0, %v971_v62 }
 0x1e4   :  { %980 = vrcp.f32 %v622_v2 }
 0x1e5   :  { %v973_v4 = vpop.eup %972 }
 0x1e6   :  { %v623_v7 = vadd.f32 1.0, %v973_v4  ;;  %v975_v12 = vpop.eup %974 }
 0x1e7   :  { %v977_v15 = vpop.eup %976  ;;  %v266_v14 = vxor.u32 2147483648, %v975_v12 }
 0x1e8   :  { %982 = vrcp.f32 %v623_v7  ;;  %v263_v16 = vxor.u32 2147483648, %v977_v15 }
 0x1e9   :  { %v267_v63 = vsel %vm265_vm10, %v266_v14, %v977_v15 }
 0x1ea   :  { %v264_v18 = vsel %vm262_vm11, %v975_v12, %v263_v16 }
 0x1eb   :  { %v268_v20 = vsel %vm261_vm12, %v264_v18, %v267_v63 }
 0x1ec   :  { %v269_v22 = vsel %vm259_vm14, nan, %v268_v20 }
 0x1ed   :  { %v979_v9 = vpop.eup %978  ;;  %v374_v5 = vadd.f32 1.0, %v269_v22 }
 0x1ee   :  { %v627_v6 = vmul.f32 %v979_v9, %v1392_v61 }
 0x1ef   :  { %v377_v54 = vmul.f32 0.5, %v374_v5 }
 0x1f0   :  { %912 = vmatmul.mubr.msk.f32.vlgmr.msra.gmra.mxu0 %vm645_vm13, %v627_v6 }
 0x1f1   :  { %v981_v24 = vpop.eup %980  ;;  %914 = vmatprep.mubr.msk.f32.mxu0 %vm1067_vm0, %v1066_v0  ;;  %v389_v52 = vmul.f32 %v827_v25, %v377_v54 }
 0x1f2   :  { %v628_v8 = vmul.f32 %v981_v24, %v1400_v23 }
 0x1f3   :  { %760 = vperm.xlu1 %947, %v389_v52  }
 0x1f4   :  { %915 = vmatmul.mubr.msk.f32.gmra.mxu0 %vm645_vm13, %v628_v8 }
 0x1f5   :  { %v983_v61 = vpop.eup %982  ;;  %917 = vmatprep.mubr.msk.f32.mxu0 %vm1067_vm0, %v1066_v0  ;;  %vm792_vm0 = vcmask 785408  }
 0x1f6   :  { %v629_v27 = vmul.f32 %v983_v61, %v1407_v32 }
 0x1f8   :  { %918 = vmatmul.mubr.msk.f32.gmra.mxu0 %vm645_vm13, %v629_v27 }
 0x250   :  { %v756_v45 = vpop.permute.xlu0 %755 }
 0x26e   :  { %v761_v57 = vpop.permute.xlu1 %760 }
 0x2b0   :  { %v721_v23 = vpop.f32.mrf.mxu0 }
 0x2b1   :  { %v722_v51 = vadd.f32 %v837_v43, %v721_v23 }
 0x2b2   :  { %v913_v26 = vpop.f32.mrf.mxu0 }
 0x2b3   :  { %v735_v29 = vsub.f32 0.0, %v722_v51 }
 0x2b4   :  { %v726_v30 = vpop.f32.mrf.mxu0 }
 0x2b5   :  { %v738_v17 = vmul.f32 1.442695, %v735_v29  ;;  %v727_v31 = vadd.f32 %v837_v43, %v726_v30 }
 0x2b6   :  { %v916_v19 = vpop.f32.mrf.mxu0 }
 0x2b7   :  { %984 = vpow2.f32 %v738_v17  ;;  %v736_v46 = vsub.f32 0.0, %v727_v31 }
 0x2b8   :  { %v731_v50 = vpop.f32.mrf.mxu0 }
 0x2b9   :  { %v740_v33 = vmul.f32 1.442695, %v736_v46  ;;  %v732_v32 = vadd.f32 %v837_v43, %v731_v50 }
 0x2ba   :  { %v919_v48 = vpop.f32.mrf.mxu0 }
 0x2bb   :  { %986 = vpow2.f32 %v740_v33  ;;  %v737_v21 = vsub.f32 0.0, %v732_v32 }
 0x2bd   :  { %v742_v28 = vmul.f32 1.442695, %v737_v21 }
 0x2bf   :  { %988 = vpow2.f32 %v742_v28 }
 0x2c4   :  { %v985_v1 = vpop.eup %984 }
 0x2c5   :  { %v744_v34 = vadd.f32 1.0, %v985_v1 }
 0x2c7   :  { %990 = vrcp.f32 %v744_v34 }
 0x2c8   :  { %v987_v13 = vpop.eup %986 }
 0x2c9   :  { %v745_v35 = vadd.f32 1.0, %v987_v13 }
 0x2cb   :  { %992 = vrcp.f32 %v745_v35 }
 0x2cc   :  { %v989_v37 = vpop.eup %988 }
 0x2cd   :  { %v746_v11 = vadd.f32 1.0, %v989_v37 }
 0x2cf   :  { %994 = vrcp.f32 %v746_v11 }
 0x2d4   :  { %v991_v42 = vpop.eup %990 }
 0x2d5   :  { %v750_v44 = vmul.f32 %v991_v42, %v722_v51 }
 0x2d7   :  { %v768_v55 = vmul.f32 %v756_v45, %v750_v44 }
 0x2d8   :  { %v993_v53 = vpop.eup %992 }
 0x2d9   :  { %793 = vst.msk [vmem:[#allocation7] sm:$0xff] %vm792_vm0, %v768_v55  ;;  %v751_v56 = vmul.f32 %v993_v53, %v727_v31 }
 0x2db   :  { %v769_v49 = vmul.f32 %v761_v57, %v751_v56 }
 0x2dc   :  { %v995_v58 = vpop.eup %994 }
 0x2dd   :  { %v752_v59 = vmul.f32 %v995_v58, %v732_v32  ;;  %794 = vst.msk [vmem:[#allocation7 + $0x8] sm:$0xff] %vm792_vm0, %v769_v49 }
 0x2df   :  { %v770_v36 = vmul.f32 %v766_v38, %v752_v59 }
 0x2e1   :  { %v791_v60 = vmul.f32 %v841_v40, %v770_v36 }
 0x2e3   :  { %795 = vst.msk [vmem:[#allocation7 + $0x10] sm:$0xff] %vm792_vm0, %v791_v60 }
 0x2e4   :  { %1047 = shalt.err (!%p1044_p0)
}
 0x2e5   :  { %807 = dma.vmem_to_hbm [thread:$0]  %s802_s1, 384, %s1465_s8, [#allocation4], %s1063_s30, %s1063_s30, %s1064_s9  }
 0x2e6   :  { %1060 = dma.done.wait [#allocation4], 384  }
 0x2e7   :  { %1061 = vsyncadd [#allocation4], 4294966912 }
 0x2e8   :  { %811 = vsyncpa [#allocation3], 1 }
 0x2e9   :  { %812 = vsyncpa [#allocation6], 1 }
 0x2ea   :  { %813 = vsyncpa [#allocation4], 1 }

</bundles_post_ra>
